<compile_context>
chip_gen: v6e
topology: v6e:2x2x1
jax: 0.10.0
libtpu: 0.0.40
codegen_flags: <defaults>
</compile_context>

<pallas_src>
import math

import jax
import jax.numpy as jnp
from jax.experimental import pallas as pl
from jax.experimental.pallas import tpu as pltpu


def _round_up(x: int, m: int) -> int:
    return ((x + m - 1) // m) * m


# ---------------------------------------------------------------------------
# Kernels
# ---------------------------------------------------------------------------

def _single_layer_kernel(x_ref, w_ref, b_ref, out_ref):
    """layer_num == 1: one wide matmul (members packed on the lane axis)."""
    y = jnp.dot(x_ref[...], w_ref[...], preferred_element_type=jnp.float32)
    out_ref[...] = (y + b_ref[...]).astype(out_ref.dtype)


def _make_fused_kernel(num_members: int, hidden_p: int, n_inner: int):
    """Fused multi-layer kernel. Ref order:
       x, W1_packed, b1_packed, (Wh_l, bh_l) * n_inner, Wf_blockdiag, bf,
       out, h_scratch
    """
    M, HP = num_members, hidden_p

    def kernel(*refs):
        x_ref, w1_ref, b1_ref = refs[0], refs[1], refs[2]
        wh_refs = [refs[3 + 2 * i] for i in range(n_inner)]
        bh_refs = [refs[4 + 2 * i] for i in range(n_inner)]
        wf_ref, bf_ref, out_ref, h_ref = refs[3 + 2 * n_inner:]

        # ---- Layer 1: shared x, all members packed along lanes -> one wide
        # MXU matmul (contraction = padded num_inputs).
        h = jnp.dot(x_ref[...], w1_ref[...], preferred_element_type=jnp.float32)
        h = jnp.maximum(h + b1_ref[...], 0.0)          # bias + ReLU in f32
        h_ref[...] = h.astype(h_ref.dtype)             # bf16 scratch for MXU

        # ---- Hidden layers: block-diagonal per member; static member unroll.
        # Each member's slice is 128-lane aligned, so reads/writes are exact
        # vreg tiles (no cross-lane shuffles).
        for wh_ref, bh_ref in zip(wh_refs, bh_refs):
            for m in range(M):
                sl = slice(m * HP, (m + 1) * HP)       # 128-aligned lane slice
                hm = h_ref[:, sl]                      # (TB, HP) bf16
                acc = jnp.dot(hm, wh_ref[m],
                              preferred_element_type=jnp.float32)
                acc = jnp.maximum(acc + bh_ref[:, sl], 0.0)
                h_ref[:, sl] = acc.astype(h_ref.dtype)

        # ---- Final layer: block-diagonal packed weight -> single matmul,
        # lane-flattened + lane-padded (TB, MO_P) store (reshaped, not
        # transposed, in the wrapper). Padded columns are exact zeros.
        y = jnp.dot(h_ref[...], wf_ref[...], preferred_element_type=jnp.float32)
        out_ref[...] = (y + bf_ref[...]).astype(out_ref.dtype)

    return kernel


# ---------------------------------------------------------------------------
# Wrapper
# ---------------------------------------------------------------------------

def ensemble_mlp_forward(x, weights, biases, *, batch_tile=None):
    """x: (B, num_inputs) f32; weights[l]: (M, in_l, out_l); biases[l]: (M, 1, out_l).
    Returns (B, M, output_size) f32, matching EnsembleMLP.forward."""
    L = len(weights)
    M = weights[0].shape[0]
    num_inputs = weights[0].shape[1]
    output_size = weights[-1].shape[2]
    B = x.shape[0]

    IN_P = _round_up(num_inputs, 128)
    if batch_tile is None:
        TB = 512 if B >= 512 else _round_up(B, 16)
    else:
        TB = batch_tile
    B_pad = _round_up(B, TB)

    MO = M * output_size
    MO_P = _round_up(MO, 128)          # lane-dense output slab (unmasked vst)

    compiler_params = pltpu.CompilerParams(
        dimension_semantics=("parallel",),
        vmem_limit_bytes=32 * 1024 * 1024,
    )

    # Pad batch + feature dims once; zero padding is exact through matmul/ReLU.
    x_p = jnp.pad(x, ((0, B_pad - B), (0, IN_P - num_inputs))).astype(jnp.bfloat16)

    if L == 1:
        w = jnp.pad(weights[0], ((0, 0), (0, IN_P - num_inputs), (0, 0)))
        w_packed = jnp.transpose(w, (1, 0, 2)).reshape(IN_P, MO)
        w_packed = jnp.pad(w_packed, ((0, 0), (0, MO_P - MO))).astype(jnp.bfloat16)
        b_packed = jnp.pad(biases[0].reshape(1, MO),
                           ((0, 0), (0, MO_P - MO))).astype(jnp.float32)

        out = pl.pallas_call(
            _single_layer_kernel,
            out_shape=jax.ShapeDtypeStruct((B_pad, MO_P), jnp.float32),
            grid_spec=pltpu.PrefetchScalarGridSpec(
                num_scalar_prefetch=0,
                grid=(B_pad // TB,),
                in_specs=[
                    pl.BlockSpec((TB, IN_P), lambda b: (b, 0)),
                    pl.BlockSpec((IN_P, MO_P), lambda b: (0, 0)),
                    pl.BlockSpec((1, MO_P), lambda b: (0, 0)),
                ],
                out_specs=pl.BlockSpec((TB, MO_P), lambda b: (b, 0)),
            ),
            compiler_params=compiler_params,
        )(x_p, w_packed, b_packed)
        return out[:B, :MO].reshape(B, M, output_size)

    # ---- L >= 2 ----
    H = weights[0].shape[2]
    HP = _round_up(H, 128)
    MH = M * HP
    n_inner = L - 2

    # Layer 1: pack all members along the output/lane axis -> (IN_P, M*HP).
    w1 = jnp.pad(weights[0], ((0, 0), (0, IN_P - num_inputs), (0, HP - H)))
    w1_packed = jnp.transpose(w1, (1, 0, 2)).reshape(IN_P, MH).astype(jnp.bfloat16)
    b1_packed = jnp.pad(biases[0], ((0, 0), (0, 0), (0, HP - H))
                        ).reshape(1, MH).astype(jnp.float32)

    # Hidden layers: keep per-member (M, HP, HP) stacks (looped inside kernel).
    hidden_ws, hidden_bs = [], []
    for l in range(1, L - 1):
        wl = jnp.pad(weights[l], ((0, 0), (0, HP - H), (0, HP - H))).astype(jnp.bfloat16)
        bl = jnp.pad(biases[l], ((0, 0), (0, 0), (0, HP - H))
                     ).reshape(1, MH).astype(jnp.float32)
        hidden_ws.append(wl)
        hidden_bs.append(bl)

    # Final layer: block-diagonal (M*HP, MO_P) so the kernel emits a
    # lane-flattened, lane-dense (TB, MO_P) slab. Extra columns are zeros.
    wl_last = jnp.pad(weights[-1], ((0, 0), (0, HP - H), (0, 0)))  # (M, HP, O)
    wf = jnp.zeros((MH, MO_P), jnp.float32)
    for m in range(M):
        wf = wf.at[m * HP:(m + 1) * HP,
                   m * output_size:(m + 1) * output_size].set(wl_last[m])
    wf = wf.astype(jnp.bfloat16)
    bf = jnp.pad(biases[-1].reshape(1, MO), ((0, 0), (0, MO_P - MO))
                 ).astype(jnp.float32)

    kernel = _make_fused_kernel(M, HP, n_inner)

    in_specs = [
        pl.BlockSpec((TB, IN_P), lambda b: (b, 0)),   # x batch tile
        pl.BlockSpec((IN_P, MH), lambda b: (0, 0)),   # layer-1 packed weights (resident)
        pl.BlockSpec((1, MH), lambda b: (0, 0)),      # layer-1 packed bias
    ]
    inputs = [x_p, w1_packed, b1_packed]
    for wl, bl in zip(hidden_ws, hidden_bs):
        in_specs.append(pl.BlockSpec((M, HP, HP), lambda b: (0, 0, 0)))
        in_specs.append(pl.BlockSpec((1, MH), lambda b: (0, 0)))
        inputs.append(wl)
        inputs.append(bl)
    in_specs.append(pl.BlockSpec((MH, MO_P), lambda b: (0, 0)))   # final block-diag W
    in_specs.append(pl.BlockSpec((1, MO_P), lambda b: (0, 0)))    # final bias
    inputs.append(wf)
    inputs.append(bf)

    out = pl.pallas_call(
        kernel,
        out_shape=jax.ShapeDtypeStruct((B_pad, MO_P), jnp.float32),
        grid_spec=pltpu.PrefetchScalarGridSpec(
            num_scalar_prefetch=0,
            grid=(B_pad // TB,),
            in_specs=in_specs,
            out_specs=pl.BlockSpec((TB, MO_P), lambda b: (b, 0)),
            scratch_shapes=[pltpu.VMEM((TB, MH), jnp.bfloat16)],  # fused activations
        ),
        compiler_params=compiler_params,
    )(*inputs)

    # Lane-flattened slab -> (B, M, output_size): slice + reshape only.
    return out[:B, :MO].reshape(B, M, output_size)


# ---------------------------------------------------------------------------
# Pure-JAX reference (mirrors the PyTorch module, f32)
# ---------------------------------------------------------------------------

def ensemble_mlp_reference(x, weights, biases):
    h = x[:, None, None, :]                      # (B, 1, 1, in)
    L = len(weights)
    for i in range(L):
        h = jnp.matmul(h, weights[i]) + biases[i]   # -> (B, M, 1, out_i)
        if i != L - 1:
            h = jnp.maximum(h, 0.0)
    return jnp.squeeze(h, axis=-2)               # (B, M, output_size)


def init_ensemble_mlp_params(key, num_inputs, hidden_size, layer_num,
                             output_size, num_members):
    if layer_num > 1:
        sizes = [(num_inputs, hidden_size)]
        sizes += [(hidden_size, hidden_size)] * (layer_num - 2)
        sizes += [(hidden_size, output_size)]
    else:
        sizes = [(num_inputs, output_size)]
    weights, biases = [], []
    for in_s, out_s in sizes:
        key, kw, kb = jax.random.split(key, 3)
        bound = 1.0 / math.sqrt(in_s)
        weights.append(jax.random.uniform(
            kw, (num_members, in_s, out_s), jnp.float32, -bound, bound))
        biases.append(jax.random.uniform(
            kb, (num_members, 1, out_s), jnp.float32, -bound, bound))
    return weights, biases


if __name__ == "__main__":
    # Small SAC-like config: EnsembleMLP(num_inputs=24, hidden=128, layers=3,
    # output_size=1, num_members=4), batch=64.
    B, num_inputs, hidden, layer_num, output_size, num_members = 64, 24, 128, 3, 1, 4

    key = jax.random.PRNGKey(0)
    key, kx = jax.random.split(key)
    x = jax.random.normal(kx, (B, num_inputs), jnp.float32)
    weights, biases = init_ensemble_mlp_params(
        key, num_inputs, hidden, layer_num, output_size, num_members)

    out = jax.jit(ensemble_mlp_forward)(x, weights, biases)
    out = jax.block_until_ready(out)

    ref = ensemble_mlp_reference(x, weights, biases)
    assert out.shape == (B, num_members, output_size), out.shape
    max_err = float(jnp.max(jnp.abs(out - ref)))
    if not (max_err < 5e-2):   # loose tolerance: bf16 MXU operands, f32 accumulate
        raise AssertionError(f"max abs error vs f32 reference too large: {max_err}")

    print("KERNEL_OK")
</pallas_src>

<mosaic_0001>
module attributes {stable_mosaic.version = 11 : i64} {
  func.func @kernel(%arg0: i32, %arg1: memref<64x128xbf16, #tpu.memory_space<vmem>>, %arg2: memref<128x512xbf16, #tpu.memory_space<vmem>>, %arg3: memref<1x512xf32, #tpu.memory_space<vmem>>, %arg4: memref<4x128x128xbf16, #tpu.memory_space<vmem>>, %arg5: memref<1x512xf32, #tpu.memory_space<vmem>>, %arg6: memref<512x128xbf16, #tpu.memory_space<vmem>>, %arg7: memref<1x128xf32, #tpu.memory_space<vmem>>, %arg8: memref<64x128xf32, #tpu.memory_space<vmem>>, %arg9: memref<64x512xbf16, #tpu.memory_space<vmem>>) attributes {dimension_semantics = [#tpu.dimension_semantics<parallel>], iteration_bounds = array<i64: 1>, scalar_prefetch = 0 : i64, scratch_operands = 1 : i64, tpu.core_type = #tpu.core_type<tc>, window_params = [{transform_indices = @transform_0, window_bounds = array<i64: 64, 128>}, {pipeline_mode = #tpu.pipeline_mode<synchronous>, transform_indices = @transform_1, window_bounds = array<i64: 128, 512>}, {pipeline_mode = #tpu.pipeline_mode<synchronous>, transform_indices = @transform_2, window_bounds = array<i64: 1, 512>}, {pipeline_mode = #tpu.pipeline_mode<synchronous>, transform_indices = @transform_3, window_bounds = array<i64: 4, 128, 128>}, {pipeline_mode = #tpu.pipeline_mode<synchronous>, transform_indices = @transform_4, window_bounds = array<i64: 1, 512>}, {pipeline_mode = #tpu.pipeline_mode<synchronous>, transform_indices = @transform_5, window_bounds = array<i64: 512, 128>}, {pipeline_mode = #tpu.pipeline_mode<synchronous>, transform_indices = @transform_6, window_bounds = array<i64: 1, 128>}, {transform_indices = @transform_7, window_bounds = array<i64: 64, 128>}]} {
    %c0 = arith.constant 0 : index
    %c0_0 = arith.constant 0 : index
    %0 = vector.load %arg1[%c0, %c0_0] : memref<64x128xbf16, #tpu.memory_space<vmem>>, vector<64x128xbf16>
    %c0_1 = arith.constant 0 : index
    %c0_2 = arith.constant 0 : index
    %1 = vector.load %arg2[%c0_1, %c0_2] : memref<128x512xbf16, #tpu.memory_space<vmem>>, vector<128x512xbf16>
    %cst = arith.constant dense<0.000000e+00> : vector<64x512xf32>
    %2 = tpu.matmul %0, %1, %cst {dimension_numbers = #tpu.dot_dimension_numbers<[1], [0], [0], [1], [0, 0, 1, 1], [], []>} : vector<64x128xbf16>, vector<128x512xbf16>, vector<64x512xf32> -> vector<64x512xf32>
    %c0_3 = arith.constant 0 : index
    %c0_4 = arith.constant 0 : index
    %3 = vector.load %arg3[%c0_3, %c0_4] : memref<1x512xf32, #tpu.memory_space<vmem>>, vector<1x512xf32>
    %4 = vector.broadcast %3 : vector<1x512xf32> to vector<64x512xf32>
    %5 = arith.addf %2, %4 : vector<64x512xf32>
    %cst_5 = arith.constant 0.000000e+00 : f32
    %6 = vector.broadcast %cst_5 : f32 to vector<64x512xf32>
    %7 = arith.maximumf %5, %6 : vector<64x512xf32>
    %8 = arith.truncf %7 : vector<64x512xf32> to vector<64x512xbf16>
    %c0_6 = arith.constant 0 : index
    %c0_7 = arith.constant 0 : index
    %9 = vector.load %arg9[%c0_6, %c0_7] : memref<64x512xbf16, #tpu.memory_space<vmem>>, vector<64x512xbf16>
    tpu.vector_store %arg9[%c0_6, %c0_7], %8 {strides = array<i32>} : memref<64x512xbf16, #tpu.memory_space<vmem>>, vector<64x512xbf16>,
    %c0_8 = arith.constant 0 : index
    %c0_9 = arith.constant 0 : index
    %10 = vector.load %arg9[%c0_8, %c0_9] : memref<64x512xbf16, #tpu.memory_space<vmem>>, vector<64x128xbf16>
    %c0_10 = arith.constant 0 : index
    %c0_11 = arith.constant 0 : index
    %c0_12 = arith.constant 0 : index
    %11 = vector.load %arg4[%c0_10, %c0_11, %c0_12] : memref<4x128x128xbf16, #tpu.memory_space<vmem>>, vector<1x128x128xbf16>
    %12 = vector.shape_cast %11 : vector<1x128x128xbf16> to vector<128x128xbf16>
    %cst_13 = arith.constant dense<0.000000e+00> : vector<64x128xf32>
    %13 = tpu.matmul %10, %12, %cst_13 {dimension_numbers = #tpu.dot_dimension_numbers<[1], [0], [0], [1], [0, 0, 1, 1], [], []>} : vector<64x128xbf16>, vector<128x128xbf16>, vector<64x128xf32> -> vector<64x128xf32>
    %c0_14 = arith.constant 0 : index
    %c0_15 = arith.constant 0 : index
    %14 = vector.load %arg5[%c0_14, %c0_15] : memref<1x512xf32, #tpu.memory_space<vmem>>, vector<1x128xf32>
    %15 = vector.broadcast %14 : vector<1x128xf32> to vector<64x128xf32>
    %16 = arith.addf %13, %15 : vector<64x128xf32>
    %cst_16 = arith.constant 0.000000e+00 : f32
    %17 = vector.broadcast %cst_16 : f32 to vector<64x128xf32>
    %18 = arith.maximumf %16, %17 : vector<64x128xf32>
    %19 = arith.truncf %18 : vector<64x128xf32> to vector<64x128xbf16>
    %c0_17 = arith.constant 0 : index
    %c0_18 = arith.constant 0 : index
    %20 = vector.load %arg9[%c0_17, %c0_18] : memref<64x512xbf16, #tpu.memory_space<vmem>>, vector<64x128xbf16>
    tpu.vector_store %arg9[%c0_17, %c0_18], %19 {strides = array<i32>} : memref<64x512xbf16, #tpu.memory_space<vmem>>, vector<64x128xbf16>,
    %c0_19 = arith.constant 0 : index
    %c128 = arith.constant 128 : index
    %21 = vector.load %arg9[%c0_19, %c128] : memref<64x512xbf16, #tpu.memory_space<vmem>>, vector<64x128xbf16>
    %c1 = arith.constant 1 : index
    %c0_20 = arith.constant 0 : index
    %c0_21 = arith.constant 0 : index
    %22 = vector.load %arg4[%c1, %c0_20, %c0_21] : memref<4x128x128xbf16, #tpu.memory_space<vmem>>, vector<1x128x128xbf16>
    %23 = vector.shape_cast %22 : vector<1x128x128xbf16> to vector<128x128xbf16>
    %cst_22 = arith.constant dense<0.000000e+00> : vector<64x128xf32>
    %24 = tpu.matmul %21, %23, %cst_22 {dimension_numbers = #tpu.dot_dimension_numbers<[1], [0], [0], [1], [0, 0, 1, 1], [], []>} : vector<64x128xbf16>, vector<128x128xbf16>, vector<64x128xf32> -> vector<64x128xf32>
    %c0_23 = arith.constant 0 : index
    %c128_24 = arith.constant 128 : index
    %25 = vector.load %arg5[%c0_23, %c128_24] : memref<1x512xf32, #tpu.memory_space<vmem>>, vector<1x128xf32>
    %26 = vector.broadcast %25 : vector<1x128xf32> to vector<64x128xf32>
    %27 = arith.addf %24, %26 : vector<64x128xf32>
    %cst_25 = arith.constant 0.000000e+00 : f32
    %28 = vector.broadcast %cst_25 : f32 to vector<64x128xf32>
    %29 = arith.maximumf %27, %28 : vector<64x128xf32>
    %30 = arith.truncf %29 : vector<64x128xf32> to vector<64x128xbf16>
    %c0_26 = arith.constant 0 : index
    %c128_27 = arith.constant 128 : index
    %31 = vector.load %arg9[%c0_26, %c128_27] : memref<64x512xbf16, #tpu.memory_space<vmem>>, vector<64x128xbf16>
    tpu.vector_store %arg9[%c0_26, %c128_27], %30 {strides = array<i32>} : memref<64x512xbf16, #tpu.memory_space<vmem>>, vector<64x128xbf16>,
    %c0_28 = arith.constant 0 : index
    %c256 = arith.constant 256 : index
    %32 = vector.load %arg9[%c0_28, %c256] : memref<64x512xbf16, #tpu.memory_space<vmem>>, vector<64x128xbf16>
    %c2 = arith.constant 2 : index
    %c0_29 = arith.constant 0 : index
    %c0_30 = arith.constant 0 : index
    %33 = vector.load %arg4[%c2, %c0_29, %c0_30] : memref<4x128x128xbf16, #tpu.memory_space<vmem>>, vector<1x128x128xbf16>
    %34 = vector.shape_cast %33 : vector<1x128x128xbf16> to vector<128x128xbf16>
    %cst_31 = arith.constant dense<0.000000e+00> : vector<64x128xf32>
    %35 = tpu.matmul %32, %34, %cst_31 {dimension_numbers = #tpu.dot_dimension_numbers<[1], [0], [0], [1], [0, 0, 1, 1], [], []>} : vector<64x128xbf16>, vector<128x128xbf16>, vector<64x128xf32> -> vector<64x128xf32>
    %c0_32 = arith.constant 0 : index
    %c256_33 = arith.constant 256 : index
    %36 = vector.load %arg5[%c0_32, %c256_33] : memref<1x512xf32, #tpu.memory_space<vmem>>, vector<1x128xf32>
    %37 = vector.broadcast %36 : vector<1x128xf32> to vector<64x128xf32>
    %38 = arith.addf %35, %37 : vector<64x128xf32>
    %cst_34 = arith.constant 0.000000e+00 : f32
    %39 = vector.broadcast %cst_34 : f32 to vector<64x128xf32>
    %40 = arith.maximumf %38, %39 : vector<64x128xf32>
    %41 = arith.truncf %40 : vector<64x128xf32> to vector<64x128xbf16>
    %c0_35 = arith.constant 0 : index
    %c256_36 = arith.constant 256 : index
    %42 = vector.load %arg9[%c0_35, %c256_36] : memref<64x512xbf16, #tpu.memory_space<vmem>>, vector<64x128xbf16>
    tpu.vector_store %arg9[%c0_35, %c256_36], %41 {strides = array<i32>} : memref<64x512xbf16, #tpu.memory_space<vmem>>, vector<64x128xbf16>,
    %c0_37 = arith.constant 0 : index
    %c384 = arith.constant 384 : index
    %43 = vector.load %arg9[%c0_37, %c384] : memref<64x512xbf16, #tpu.memory_space<vmem>>, vector<64x128xbf16>
    %c3 = arith.constant 3 : index
    %c0_38 = arith.constant 0 : index
    %c0_39 = arith.constant 0 : index
    %44 = vector.load %arg4[%c3, %c0_38, %c0_39] : memref<4x128x128xbf16, #tpu.memory_space<vmem>>, vector<1x128x128xbf16>
    %45 = vector.shape_cast %44 : vector<1x128x128xbf16> to vector<128x128xbf16>
    %cst_40 = arith.constant dense<0.000000e+00> : vector<64x128xf32>
    %46 = tpu.matmul %43, %45, %cst_40 {dimension_numbers = #tpu.dot_dimension_numbers<[1], [0], [0], [1], [0, 0, 1, 1], [], []>} : vector<64x128xbf16>, vector<128x128xbf16>, vector<64x128xf32> -> vector<64x128xf32>
    %c0_41 = arith.constant 0 : index
    %c384_42 = arith.constant 384 : index
    %47 = vector.load %arg5[%c0_41, %c384_42] : memref<1x512xf32, #tpu.memory_space<vmem>>, vector<1x128xf32>
    %48 = vector.broadcast %47 : vector<1x128xf32> to vector<64x128xf32>
    %49 = arith.addf %46, %48 : vector<64x128xf32>
    %cst_43 = arith.constant 0.000000e+00 : f32
    %50 = vector.broadcast %cst_43 : f32 to vector<64x128xf32>
    %51 = arith.maximumf %49, %50 : vector<64x128xf32>
    %52 = arith.truncf %51 : vector<64x128xf32> to vector<64x128xbf16>
    %c0_44 = arith.constant 0 : index
    %c384_45 = arith.constant 384 : index
    %53 = vector.load %arg9[%c0_44, %c384_45] : memref<64x512xbf16, #tpu.memory_space<vmem>>, vector<64x128xbf16>
    tpu.vector_store %arg9[%c0_44, %c384_45], %52 {strides = array<i32>} : memref<64x512xbf16, #tpu.memory_space<vmem>>, vector<64x128xbf16>,
    %c0_46 = arith.constant 0 : index
    %c0_47 = arith.constant 0 : index
    %54 = vector.load %arg9[%c0_46, %c0_47] : memref<64x512xbf16, #tpu.memory_space<vmem>>, vector<64x512xbf16>
    %c0_48 = arith.constant 0 : index
    %c0_49 = arith.constant 0 : index
    %55 = vector.load %arg6[%c0_48, %c0_49] : memref<512x128xbf16, #tpu.memory_space<vmem>>, vector<512x128xbf16>
    %cst_50 = arith.constant dense<0.000000e+00> : vector<64x128xf32>
    %56 = tpu.matmul %54, %55, %cst_50 {dimension_numbers = #tpu.dot_dimension_numbers<[1], [0], [0], [1], [0, 0, 1, 1], [], []>} : vector<64x512xbf16>, vector<512x128xbf16>, vector<64x128xf32> -> vector<64x128xf32>
    %c0_51 = arith.constant 0 : index
    %c0_52 = arith.constant 0 : index
    %57 = vector.load %arg7[%c0_51, %c0_52] : memref<1x128xf32, #tpu.memory_space<vmem>>, vector<1x128xf32>
    %58 = vector.broadcast %57 : vector<1x128xf32> to vector<64x128xf32>
    %59 = arith.addf %56, %58 : vector<64x128xf32>
    %c0_53 = arith.constant 0 : index
    %c0_54 = arith.constant 0 : index
    %60 = vector.load %arg8[%c0_53, %c0_54] : memref<64x128xf32, #tpu.memory_space<vmem>>, vector<64x128xf32>
    tpu.vector_store %arg8[%c0_53, %c0_54], %59 {strides = array<i32>} : memref<64x128xf32, #tpu.memory_space<vmem>>, vector<64x128xf32>,
    return
  }
  func.func @transform_0(%arg0: i32) -> (i32, i32) {
    %c0_i32 = arith.constant 0 : i32
    %c0_i32_0 = arith.constant 0 : i32
    return %arg0, %c0_i32 : i32, i32
  }
  func.func @transform_1(%arg0: i32) -> (i32, i32) {
    %c0_i32 = arith.constant 0 : i32
    %c0_i32_0 = arith.constant 0 : i32
    %c0_i32_1 = arith.constant 0 : i32
    return %c0_i32, %c0_i32_0 : i32, i32
  }
  func.func @transform_2(%arg0: i32) -> (i32, i32) {
    %c0_i32 = arith.constant 0 : i32
    %c0_i32_0 = arith.constant 0 : i32
    %c0_i32_1 = arith.constant 0 : i32
    return %c0_i32, %c0_i32_0 : i32, i32
  }
  func.func @transform_3(%arg0: i32) -> (i32, i32, i32) {
    %c0_i32 = arith.constant 0 : i32
    %c0_i32_0 = arith.constant 0 : i32
    %c0_i32_1 = arith.constant 0 : i32
    %c0_i32_2 = arith.constant 0 : i32
    return %c0_i32, %c0_i32_0, %c0_i32_1 : i32, i32, i32
  }
  func.func @transform_4(%arg0: i32) -> (i32, i32) {
    %c0_i32 = arith.constant 0 : i32
    %c0_i32_0 = arith.constant 0 : i32
    %c0_i32_1 = arith.constant 0 : i32
    return %c0_i32, %c0_i32_0 : i32, i32
  }
  func.func @transform_5(%arg0: i32) -> (i32, i32) {
    %c0_i32 = arith.constant 0 : i32
    %c0_i32_0 = arith.constant 0 : i32
    %c0_i32_1 = arith.constant 0 : i32
    return %c0_i32, %c0_i32_0 : i32, i32
  }
  func.func @transform_6(%arg0: i32) -> (i32, i32) {
    %c0_i32 = arith.constant 0 : i32
    %c0_i32_0 = arith.constant 0 : i32
    %c0_i32_1 = arith.constant 0 : i32
    return %c0_i32, %c0_i32_0 : i32, i32
  }
  func.func @transform_7(%arg0: i32) -> (i32, i32) {
    %c0_i32 = arith.constant 0 : i32
    %c0_i32_0 = arith.constant 0 : i32
    return %arg0, %c0_i32 : i32, i32
  }
}

</mosaic_0001>

<bundles_post_ra>
// kernel: ensemble_mlp_forward.1
= control target key start
LH: loop header
LB: loop body
LE: loop exit
PB: predicated region body
PF: predicated region fallthrough
CT: control target
= control target key end

     0   :  { %v2593_v1 = vmov 0   ;;  %v69_v55 = vlaneseq  ;;  %s3072_s1 = inlined_call_operand.vmem [shape: bf16[128,512], index: 1, kind: input, shape index: {}]   ;;  %s3073_s0 = inlined_call_operand.vmem [shape: bf16[64,128], index: 0, kind: input, shape index: {}]   ;;  %s3074_s3 = inlined_call_operand.vmem [shape: bf16[4,128,128], index: 3, kind: input, shape index: {}]   ;;  %s3075_s5 = inlined_call_operand.vmem [shape: bf16[512,128], index: 5, kind: input, shape index: {}]   ;;  %s3076_s2 = inlined_call_operand.vmem [shape: f32[1,512], index: 2, kind: input, shape index: {}]   ;;  %s3077_s4 = inlined_call_operand.vmem [shape: f32[1,512], index: 4, kind: input, shape index: {}]   ;;  %s3078_s6 = inlined_call_operand.vmem [shape: f32[1,128], index: 6, kind: input, shape index: {}]   ;;  %s3079_s7 = inlined_call_operand.vmem [shape: f32[64,128], index: 7, kind: output, shape index: {}]  }
   0x1   :  { %v2437_v0 = vld [vmem:[%s3072_s1 + $0xe4] ss:$16 sps:$4 sm:$0xff]   ;;  %305 = vmatprep.mubr.bf16.mxu0 %v2593_v1  ;;  %378 = vmatprep.mubr.bf16.mxu1 %v2593_v1  ;;  %v2439_v2 = vld [vmem:[%s3072_s1 + $0xe0] ss:$16 sps:$4 sm:$0xff]   ;;  %v2455_v8 = vld [vmem:[%s3072_s1 + $0xec] ss:$16 sps:$4 sm:$0xff]  }
   0x2   :  { %273 = vmatprep.subr.bf16.mxu0 %v2437_v0  ;;  %v2440_v3 = vld [vmem:[%s3072_s1 + $0xc4] ss:$16 sps:$4 sm:$0xff]   ;;  %v2442_v4 = vld [vmem:[%s3072_s1 + $0xc0] ss:$16 sps:$4 sm:$0xff]   ;;  %346 = vmatprep.subr.bf16.mxu1 %v2455_v8  ;;  %v2459_v10 = vld [vmem:[%s3072_s1 + $0xe8] ss:$16 sps:$4 sm:$0xff]  }
   0x3   :  { %274 = vmatpush1.bf16.msra.mxu0 %v2439_v2  ;;  %v2443_v5 = vld [vmem:[%s3072_s1 + $0xa4] ss:$16 sps:$4 sm:$0xff]   ;;  %v2445_v6 = vld [vmem:[%s3072_s1 + $0xa0] ss:$16 sps:$4 sm:$0xff]   ;;  %v2461_v11 = vld [vmem:[%s3072_s1 + $0xcc] ss:$16 sps:$4 sm:$0xff]   ;;  %347 = vmatpush1.bf16.msra.mxu1 %v2459_v10 }
   0x4   :  { %275 = vmatprep.subr.bf16.mxu0 %v2440_v3  ;;  %v2446_v7 = vld [vmem:[%s3072_s1 + $0x84] ss:$16 sps:$4 sm:$0xff]   ;;  %v2448_v9 = vld [vmem:[%s3072_s1 + $0x80] ss:$16 sps:$4 sm:$0xff]   ;;  %v2465_v13 = vld [vmem:[%s3072_s1 + $0xc8] ss:$16 sps:$4 sm:$0xff]   ;;  %348 = vmatprep.subr.bf16.mxu1 %v2461_v11 }
   0x5   :  { %v2449_v12 = vld [vmem:[%s3072_s1 + $0x64] ss:$16 sps:$4 sm:$0xff]   ;;  %v2467_v14 = vld [vmem:[%s3072_s1 + $0xac] ss:$16 sps:$4 sm:$0xff]   ;;  %v2451_v15 = vld [vmem:[%s3072_s1 + $0x60] ss:$16 sps:$4 sm:$0xff]  }
   0x6   :  { %v2452_v16 = vld [vmem:[%s3072_s1 + $0x44] ss:$16 sps:$4 sm:$0xff]   ;;  %v2470_v17 = vld [vmem:[%s3072_s1 + $0xa8] ss:$16 sps:$4 sm:$0xff]   ;;  %v2471_v18 = vld [vmem:[%s3072_s1 + $0x8c] ss:$16 sps:$4 sm:$0xff]  }
   0x7   :  { %276 = vmatpush1.bf16.msra.mxu0 %v2442_v4  ;;  %349 = vmatpush1.bf16.msra.mxu1 %v2465_v13  ;;  %v2454_v19 = vld [vmem:[%s3072_s1 + $0x40] ss:$16 sps:$4 sm:$0xff]   ;;  %v2457_v20 = vld [vmem:[%s3072_s1 + $0x24] ss:$16 sps:$4 sm:$0xff]   ;;  %v2473_v21 = vld [vmem:[%s3072_s1 + $0x88] ss:$16 sps:$4 sm:$0xff]  }
   0x8   :  { %277 = vmatprep.subr.bf16.mxu0 %v2443_v5  ;;  %350 = vmatprep.subr.bf16.mxu1 %v2467_v14  ;;  %v2474_v22 = vld [vmem:[%s3072_s1 + $0x6c] ss:$16 sps:$4 sm:$0xff]   ;;  %v2460_v23 = vld [vmem:[%s3072_s1 + $0x20] ss:$16 sps:$4 sm:$0xff]   ;;  %v2463_v24 = vld [vmem:[%s3072_s1 + $0x4] ss:$16 sps:$4 sm:$0xff]  }
   0x9   :  { %v2477_v25 = vld [vmem:[%s3072_s1 + $0x68] ss:$16 sps:$4 sm:$0xff]   ;;  %v2466_v26 = vld [vmem:[%s3072_s1] ss:$16 sps:$4 sm:$0xff]   ;;  %v2478_v27 = vld [vmem:[%s3072_s1 + $0x4c] ss:$16 sps:$4 sm:$0xff]  }
   0xa   :  { %v2480_v28 = vld [vmem:[%s3072_s1 + $0x48] ss:$16 sps:$4 sm:$0xff]   ;;  %v2481_v29 = vld [vmem:[%s3072_s1 + $0x2c] ss:$16 sps:$4 sm:$0xff]   ;;  %v2469_v31 = vld [vmem:[%s3073_s0] sm:$0xff]   ;;  %v70_v56 = vshrl.u32 %v69_v55, 7 }
   0xb   :  { %278 = vmatpush1.bf16.msra.mxu0 %v2445_v6  ;;  %351 = vmatpush1.bf16.msra.mxu1 %v2470_v17  ;;  %v2489_v30 = vld [vmem:[%s3074_s3 + $0x38] sm:$0xff]   ;;  %v2476_v36 = vld [vmem:[%s3073_s0 + $0x8] sm:$0xff]   ;;  %v2483_v37 = vld [vmem:[%s3073_s0 + $0x10] sm:$0xff]  }
   0xc   :  { %279 = vmatprep.subr.bf16.mxu0 %v2446_v7  ;;  %352 = vmatprep.subr.bf16.mxu1 %v2471_v18  ;;  %v2484_v32 = vld [vmem:[%s3072_s1 + $0x28] ss:$16 sps:$4 sm:$0xff]   ;;  %v2485_v33 = vld [vmem:[%s3072_s1 + $0xc] ss:$16 sps:$4 sm:$0xff]   ;;  %v2491_v39 = vld [vmem:[%s3074_s3 + $0x30] sm:$0xff]   ;;  %v71_v57 = vsub.s32 0, %v70_v56 }
   0xd   :  { %v2487_v34 = vld [vmem:[%s3072_s1 + $0x8] ss:$16 sps:$4 sm:$0xff]   ;;  %v2492_v40 = vld [vmem:[%s3074_s3 + $0x70] sm:$0xff]   ;;  %v2495_v43 = vld [vmem:[%s3074_s3 + $0x20] sm:$0xff]   ;;  %v75_v59 = vsub.s32 1, %v70_v56  ;;  %v83_v4 = vsub.s32 3, %v70_v56 }
   0xe   :  { %v2490_v35 = vld [vmem:[%s3074_s3 + $0x78] sm:$0xff]   ;;  %v2493_v41 = vld [vmem:[%s3074_s3 + $0x28] sm:$0xff]   ;;  %v2496_v44 = vld [vmem:[%s3074_s3 + $0x60] sm:$0xff]  }
   0xf   :  { %280 = vmatpush1.bf16.msra.mxu0 %v2448_v9  ;;  %353 = vmatpush1.bf16.msra.mxu1 %v2473_v21  ;;  %v2488_v38 = vld [vmem:[%s3073_s0 + $0x18] sm:$0xff]   ;;  %v2494_v42 = vld [vmem:[%s3074_s3 + $0x68] sm:$0xff]   ;;  %v2499_v47 = vld [vmem:[%s3074_s3 + $0x10] sm:$0xff]  }
  0x10   :  { %281 = vmatprep.subr.bf16.mxu0 %v2449_v12  ;;  %354 = vmatprep.subr.bf16.mxu1 %v2474_v22  ;;  %v2497_v45 = vld [vmem:[%s3074_s3 + $0x18] sm:$0xff]   ;;  %v2500_v48 = vld [vmem:[%s3074_s3 + $0x50] sm:$0xff]   ;;  %v2501_v49 = vld [vmem:[%s3074_s3 + $0x8] sm:$0xff]  }
  0x11   :  { %v2498_v46 = vld [vmem:[%s3074_s3 + $0x58] sm:$0xff]   ;;  %v2502_v50 = vld [vmem:[%s3074_s3 + $0x48] sm:$0xff]   ;;  %v2505_v51 = vld [vmem:[%s3074_s3] sm:$0xff]  }
  0x12   :  { %v2506_v52 = vld [vmem:[%s3074_s3 + $0x40] sm:$0xff]   ;;  %v2801_v53 = vld [vmem:[%s3074_s3 + $0xb8] sm:$0xff]  }
  0x13   :  { %282 = vmatpush1.bf16.msra.mxu0 %v2451_v15  ;;  %355 = vmatpush1.bf16.msra.mxu1 %v2477_v25  ;;  %v2806_v54 = vld [vmem:[%s3074_s3 + $0xf8] sm:$0xff]   ;;  %v67_v58 = vld [vmem:[%s3076_s2] sm:$0xf] }
  0x14   :  { %283 = vmatprep.subr.bf16.mxu0 %v2452_v16  ;;  %356 = vmatprep.subr.bf16.mxu1 %v2478_v27  ;;  %v2813_v60 = vrot.slane %v67_v58, %v71_v57  ;;  %v2815_v61 = vrot.slane %v67_v58, %v75_v59  ;;  %v2823_v13 = vrot.slane %v67_v58, %v83_v4 }
  0x17   :  { %284 = vmatpush1.bf16.msra.mxu0 %v2454_v19  ;;  %357 = vmatpush1.bf16.msra.mxu1 %v2480_v28 }
  0x18   :  { %285 = vmatprep.subr.bf16.mxu0 %v2457_v20  ;;  %358 = vmatprep.subr.bf16.mxu1 %v2481_v29 }
  0x1b   :  { %286 = vmatpush1.bf16.msra.mxu0 %v2460_v23  ;;  %359 = vmatpush1.bf16.msra.mxu1 %v2484_v32 }
  0x1c   :  { %287 = vmatprep.subr.bf16.mxu0 %v2463_v24  ;;  %360 = vmatprep.subr.bf16.mxu1 %v2485_v33 }
  0x1f   :  { %288 = vmatpush1.bf16.msra.mxu0 %v2466_v26  ;;  %361 = vmatpush1.bf16.msra.mxu1 %v2487_v34 }
  0x20   :  { %2340 = vmatprep.subr.bf16.mxu0 %v2489_v30  ;;  %2364 = vmatprep.subr.bf16.mxu1 %v2490_v35 }
  0x22   :  { %306 = vmatmul.mubr.bf16.vlgmr.msra.gmra.mxu0 %v2469_v31  ;;  %379 = vmatmul.mubr.bf16.vlgmr.msra.gmra.mxu1 %v2469_v31 }
  0x23   :  { %315 = vmatprep.mubr.bf16.mxu0 %v2593_v1  ;;  %2341 = vmatpush3.bf16.msra.mxu0 %v2489_v30 }
  0x24   :  { %388 = vmatprep.mubr.bf16.mxu1 %v2593_v1  ;;  %2365 = vmatpush3.bf16.msra.mxu1 %v2490_v35 }
  0x25   :  { %2342 = vmatprep.subr.bf16.mxu0 %v2491_v39  ;;  %2366 = vmatprep.subr.bf16.mxu1 %v2492_v40 }
  0x27   :  { %2343 = vmatpush3.bf16.msra.mxu0 %v2491_v39 }
  0x28   :  { %2367 = vmatpush3.bf16.msra.mxu1 %v2492_v40  ;;  %2344 = vmatprep.subr.bf16.mxu0 %v2493_v41 }
  0x29   :  { %2368 = vmatprep.subr.bf16.mxu1 %v2494_v42 }
  0x2a   :  { %316 = vmatmul.mubr.bf16.gmra.mxu0 %v2476_v36  ;;  %389 = vmatmul.mubr.bf16.gmra.mxu1 %v2476_v36 }
  0x2b   :  { %325 = vmatprep.mubr.bf16.mxu0 %v2593_v1  ;;  %398 = vmatprep.mubr.bf16.mxu1 %v2593_v1 }
  0x2c   :  { %2345 = vmatpush3.bf16.msra.mxu0 %v2493_v41  ;;  %2369 = vmatpush3.bf16.msra.mxu1 %v2494_v42 }
  0x2d   :  { %2346 = vmatprep.subr.bf16.mxu0 %v2495_v43  ;;  %2370 = vmatprep.subr.bf16.mxu1 %v2496_v44 }
  0x30   :  { %2347 = vmatpush3.bf16.msra.mxu0 %v2495_v43  ;;  %2371 = vmatpush3.bf16.msra.mxu1 %v2496_v44 }
  0x31   :  { %2348 = vmatprep.subr.bf16.mxu0 %v2497_v45  ;;  %2372 = vmatprep.subr.bf16.mxu1 %v2498_v46 }
  0x32   :  { %326 = vmatmul.mubr.bf16.gmra.mxu0 %v2483_v37  ;;  %399 = vmatmul.mubr.bf16.gmra.mxu1 %v2483_v37 }
  0x33   :  { %335 = vmatprep.mubr.bf16.mxu0 %v2593_v1  ;;  %408 = vmatprep.mubr.bf16.mxu1 %v2593_v1  ;;  %v79_v1 = vsub.s32 2, %v70_v56 }
  0x34   :  { %2349 = vmatpush3.bf16.msra.mxu0 %v2497_v45  ;;  %2373 = vmatpush3.bf16.msra.mxu1 %v2498_v46 }
  0x35   :  { %2350 = vmatprep.subr.bf16.mxu0 %v2499_v47  ;;  %2374 = vmatprep.subr.bf16.mxu1 %v2500_v48  ;;  %v2820_v9 = vrot.slane %v67_v58, %v79_v1 }
  0x38   :  { %2351 = vmatpush3.bf16.msra.mxu0 %v2499_v47  ;;  %2375 = vmatpush3.bf16.msra.mxu1 %v2500_v48 }
  0x39   :  { %2352 = vmatprep.subr.bf16.mxu0 %v2501_v49  ;;  %2376 = vmatprep.subr.bf16.mxu1 %v2502_v50 }
  0x3a   :  { %336 = vmatmul.mubr.bf16.gmra.mxu0 %v2488_v38  ;;  %409 = vmatmul.mubr.bf16.gmra.mxu1 %v2488_v38 }
  0x3c   :  { %2353 = vmatpush3.bf16.msra.mxu0 %v2501_v49  ;;  %2377 = vmatpush3.bf16.msra.mxu1 %v2502_v50 }
  0x3d   :  { %2354 = vmatprep.subr.bf16.mxu0 %v2505_v51  ;;  %2378 = vmatprep.subr.bf16.mxu1 %v2506_v52 }
  0x40   :  { %2355 = vmatpush3.bf16.msra.mxu0 %v2505_v51  ;;  %2379 = vmatpush3.bf16.msra.mxu1 %v2506_v52 }
  0x41   :  { %2388 = vmatprep.subr.bf16.mxu0 %v2801_v53  ;;  %2412 = vmatprep.subr.bf16.mxu1 %v2806_v54 }
  0xe2   :  { %v307_v62 = vpop.f32.mrf.mxu0  ;;  %v380_v17 = vpop.f32.mrf.mxu1 }
  0xe3   :  { %v308_v63 = vadd.f32 %v307_v62, %v2813_v60  ;;  %v381_v19 = vadd.f32 %v380_v17, %v2820_v9 }
  0xe4   :  { %v309_v0 = vpop.f32.mrf.mxu0  ;;  %v382_v22 = vpop.f32.mrf.mxu1 }
  0xe5   :  { %v310_v2 = vadd.f32 %v309_v0, %v2815_v61  ;;  %v419_v5 = vmax.f32 %v308_v63, 0.0  ;;  %v421_v24 = vmax.f32 %v381_v19, 0.0  ;;  %v383_v25 = vadd.f32 %v382_v22, %v2823_v13  ;;  %v2511_v22 = vld [vmem:[%s3074_s3 + $0xb0] sm:$0xff]  }
  0xe6   :  { %v311_v3 = vpop.f32.mrf.mxu0  ;;  %v384_v29 = vpop.f32.mrf.mxu1 }
  0xe7   :  { %v420_v6 = vmax.f32 %v310_v2, 0.0  ;;  %v312_v7 = vadd.f32 %v311_v3, %v2813_v60  ;;  %v422_v31 = vmax.f32 %v383_v25, 0.0  ;;  %v385_v32 = vadd.f32 %v384_v29, %v2820_v9 }
  0xe8   :  { %v313_v8 = vpop.f32.mrf.mxu0  ;;  %v386_v35 = vpop.f32.mrf.mxu1 }
  0xe9   :  { %v2164_v10 = vpack.c.bf16 %v420_v6, %v419_v5  ;;  %v314_v11 = vadd.f32 %v313_v8, %v2815_v61  ;;  %v423_v14 = vmax.f32 %v312_v7, 0.0  ;;  %v2165_v37 = vpack.c.bf16 %v422_v31, %v421_v24 }
  0xea   :  { %v317_v12 = vpop.f32.mrf.mxu0  ;;  %v425_v38 = vmax.f32 %v385_v32, 0.0  ;;  %v387_v39 = vadd.f32 %v386_v35, %v2823_v13  ;;  %v390_v43 = vpop.f32.mrf.mxu1 }
  0xeb   :  { %547 = vst [vmem:[#allocation2] sm:$0xff] %v2164_v10  ;;  %v424_v15 = vmax.f32 %v314_v11, 0.0  ;;  %v318_v16 = vadd.f32 %v317_v12, %v2813_v60  ;;  %548 = vst [vmem:[#allocation2 + $0x8] sm:$0xff] %v2165_v37  ;;  %v391_v46 = vadd.f32 %v390_v43, %v2820_v9 }
  0xec   :  { %v319_v18 = vpop.f32.mrf.mxu0  ;;  %v426_v45 = vmax.f32 %v387_v39, 0.0  ;;  %v392_v50 = vpop.f32.mrf.mxu1 }
  0xed   :  { %v2166_v20 = vpack.c.bf16 %v424_v15, %v423_v14  ;;  %v320_v21 = vadd.f32 %v319_v18, %v2815_v61  ;;  %v427_v26 = vmax.f32 %v318_v16, 0.0  ;;  %v393_v56 = vadd.f32 %v392_v50, %v2823_v13 }
  0xee   :  { %v321_v23 = vpop.f32.mrf.mxu0  ;;  %v2167_v55 = vpack.c.bf16 %v426_v45, %v425_v38  ;;  %v429_v62 = vmax.f32 %v391_v46, 0.0  ;;  %v394_v63 = vpop.f32.mrf.mxu1 }
  0xef   :  { %549 = vst [vmem:[#allocation2 + $0x10] sm:$0xff] %v2166_v20  ;;  %v428_v27 = vmax.f32 %v320_v21, 0.0  ;;  %v322_v28 = vadd.f32 %v321_v23, %v2813_v60  ;;  %v430_v1 = vmax.f32 %v393_v56, 0.0  ;;  %v395_v2 = vadd.f32 %v394_v63, %v2820_v9  ;;  %v2512_v23 = vld [vmem:[%s3074_s3 + $0xf0] sm:$0xff]   ;;  %v2519_v63 = vld [vmem:[%s3074_s3 + $0x98] sm:$0xff]  }
  0xf0   :  { %v323_v30 = vpop.f32.mrf.mxu0  ;;  %550 = vst [vmem:[#allocation2 + $0x18] sm:$0xff] %v2167_v55  ;;  %v396_v6 = vpop.f32.mrf.mxu1  ;;  %v2518_v55 = vld [vmem:[%s3074_s3 + $0xe0] sm:$0xff]  }
  0xf1   :  { %v2168_v33 = vpack.c.bf16 %v428_v27, %v427_v26  ;;  %v324_v34 = vadd.f32 %v323_v30, %v2815_v61  ;;  %v431_v40 = vmax.f32 %v322_v28, 0.0  ;;  %v2169_v8 = vpack.c.bf16 %v430_v1, %v429_v62 }
  0xf2   :  { %v327_v36 = vpop.f32.mrf.mxu0  ;;  %v433_v10 = vmax.f32 %v395_v2, 0.0  ;;  %v397_v11 = vadd.f32 %v396_v6, %v2823_v13  ;;  %v400_v15 = vpop.f32.mrf.mxu1 }
  0xf3   :  { %551 = vst [vmem:[#allocation2 + $0x20] sm:$0xff] %v2168_v33  ;;  %v432_v41 = vmax.f32 %v324_v34, 0.0  ;;  %v328_v42 = vadd.f32 %v327_v36, %v2813_v60  ;;  %552 = vst [vmem:[#allocation2 + $0x28] sm:$0xff] %v2169_v8  ;;  %v401_v18 = vadd.f32 %v400_v15, %v2820_v9  ;;  %v2530_v15 = vld [vmem:[%s3074_s3 + $0xc0] sm:$0xff]  }
  0xf4   :  { %v329_v44 = vpop.f32.mrf.mxu0  ;;  %v434_v17 = vmax.f32 %v397_v11, 0.0  ;;  %v402_v24 = vpop.f32.mrf.mxu1  ;;  %v2527_v11 = vld [vmem:[%s3074_s3 + $0x88] sm:$0xff]  }
  0xf5   :  { %v2170_v47 = vpack.c.bf16 %v432_v41, %v431_v40  ;;  %v435_v48 = vmax.f32 %v328_v42, 0.0  ;;  %v330_v49 = vadd.f32 %v329_v44, %v2815_v61  ;;  %v403_v28 = vadd.f32 %v402_v24, %v2823_v13 }
  0xf6   :  { %v331_v51 = vpop.f32.mrf.mxu0  ;;  %v2503_v52 = vld [vmem:[#allocation2] ss:$16 sps:$4 sm:$0xff]   ;;  %v2504_v59 = vld [vmem:[#allocation2 + $0x4] ss:$16 sps:$4 sm:$0xff]   ;;  %v2171_v27 = vpack.c.bf16 %v434_v17, %v433_v10  ;;  %v437_v32 = vmax.f32 %v401_v18, 0.0  ;;  %v404_v33 = vpop.f32.mrf.mxu1 }
  0xf7   :  { %553 = vst [vmem:[#allocation2 + $0x30] sm:$0xff] %v2170_v47  ;;  %v436_v57 = vmax.f32 %v330_v49, 0.0  ;;  %v332_v58 = vadd.f32 %v331_v51, %v2813_v60  ;;  %2356 = vmatprep.mubr.bf16.mxu0 %v2503_v52  ;;  %2380 = vmatprep.mubr.bf16.mxu1 %v2504_v59  ;;  %v438_v35 = vmax.f32 %v403_v28, 0.0  ;;  %v405_v36 = vadd.f32 %v404_v33, %v2820_v9  ;;  %v2517_v47 = vld [vmem:[%s3074_s3 + $0xa0] sm:$0xff]   ;;  %v2526_v10 = vld [vmem:[%s3074_s3 + $0xd0] sm:$0xff]  }
  0xf8   :  { %v333_v0 = vpop.f32.mrf.mxu0  ;;  %554 = vst [vmem:[#allocation2 + $0x38] sm:$0xff] %v2171_v27  ;;  %v406_v40 = vpop.f32.mrf.mxu1  ;;  %v2542_v27 = vld [vmem:[%s3075_s5 + $0x28] sm:$0xff]   ;;  %v2543_v28 = vld [vmem:[%s3075_s5 + $0x60] sm:$0xff]   ;;  %v2548_v33 = vld [vmem:[%s3075_s5 + $0x10] sm:$0xff]  }
  0xf9   :  { %v2172_v3 = vpack.c.bf16 %v436_v57, %v435_v48  ;;  %v439_v4 = vmax.f32 %v332_v58, 0.0  ;;  %v334_v5 = vadd.f32 %v333_v0, %v2815_v61  ;;  %v2173_v41 = vpack.c.bf16 %v438_v35, %v437_v32  ;;  %v2547_v32 = vld [vmem:[%s3075_s5 + $0x50] sm:$0xff]   ;;  %v2550_v35 = vld [vmem:[%s3075_s5 + $0x8] sm:$0xff]  }
  0xfa   :  { %v337_v7 = vpop.f32.mrf.mxu0  ;;  %v441_v42 = vmax.f32 %v405_v36, 0.0  ;;  %v407_v43 = vadd.f32 %v406_v40, %v2823_v13  ;;  %v2551_v36 = vld [vmem:[%s3075_s5 + $0x40] sm:$0xff]   ;;  %v2560_v40 = vld [vmem:[%s3075_s5 + $0xf0] sm:$0xff]  }
  0xfb   :  { %555 = vst [vmem:[#allocation2 + $0x40] sm:$0xff] %v2172_v3  ;;  %v440_v12 = vmax.f32 %v334_v5, 0.0  ;;  %v338_v14 = vadd.f32 %v337_v7, %v2813_v60  ;;  %556 = vst [vmem:[#allocation2 + $0x48] sm:$0xff] %v2173_v41  ;;  %v2520_v3 = vld [vmem:[%s3074_s3 + $0xd8] sm:$0xff]   ;;  %v2525_v5 = vld [vmem:[%s3074_s3 + $0x90] sm:$0xff]  }
  0xfc   :  { %v339_v16 = vpop.f32.mrf.mxu0  ;;  %v442_v45 = vmax.f32 %v407_v43, 0.0  ;;  %v2562_v41 = vld [vmem:[%s3075_s5 + $0xe8] sm:$0xff]   ;;  %v2565_v43 = vld [vmem:[%s3075_s5 + $0xe0] sm:$0xff]  }
  0xfd   :  { %v2174_v19 = vpack.c.bf16 %v440_v12, %v439_v4  ;;  %v443_v20 = vmax.f32 %v338_v14, 0.0  ;;  %v340_v21 = vadd.f32 %v339_v16, %v2815_v61  ;;  %v2523_v4 = vld [vmem:[#allocation2 + $0x8] ss:$16 sps:$4 sm:$0xff]   ;;  %v2529_v14 = vld [vmem:[%s3074_s3 + $0x80] sm:$0xff]  }
  0xfe   :  { %v341_v25 = vpop.f32.mrf.mxu0  ;;  %v2509_v26 = vld [vmem:[#allocation2 + $0x20] ss:$16 sps:$4 sm:$0xff]   ;;  %v2510_v31 = vld [vmem:[#allocation2 + $0x24] ss:$16 sps:$4 sm:$0xff]   ;;  %v2175_v50 = vpack.c.bf16 %v442_v45, %v441_v42  ;;  %v2528_v12 = vld [vmem:[%s3074_s3 + $0xc8] sm:$0xff]  }
  0xff   :  { %557 = vst [vmem:[#allocation2 + $0x50] sm:$0xff] %v2174_v19  ;;  %v444_v29 = vmax.f32 %v340_v21, 0.0  ;;  %v342_v30 = vadd.f32 %v341_v25, %v2813_v60  ;;  %2357 = vmatmul.mubr.bf16.vlgmr.msra.gmra.mxu0 %v2509_v26  ;;  %2381 = vmatmul.mubr.bf16.vlgmr.msra.gmra.mxu1 %v2510_v31  ;;  %v2513_v60 = vld [vmem:[%s3074_s3 + $0xa8] sm:$0xff]   ;;  %v2537_v16 = vld [vmem:[%s3075_s5 + $0x78] sm:$0xff]   ;;  %v2574_v45 = vld [vmem:[%s3075_s5 + $0xd0] sm:$0xff]  }
 0x100   :  { %v343_v34 = vpop.f32.mrf.mxu0  ;;  %2389 = vmatpush3.bf16.msra.mxu0 %v2801_v53  ;;  %2413 = vmatpush3.bf16.msra.mxu1 %v2806_v54  ;;  %v410_v53 = vpop.f32.mrf.mxu1  ;;  %558 = vst [vmem:[#allocation2 + $0x58] sm:$0xff] %v2175_v50  ;;  %v2531_v18 = vld [vmem:[#allocation2 + $0x28] ss:$16 sps:$4 sm:$0xff]   ;;  %v2532_v21 = vld [vmem:[#allocation2 + $0x2c] ss:$16 sps:$4 sm:$0xff]  }
 0x101   :  { %v2176_v37 = vpack.c.bf16 %v444_v29, %v443_v20  ;;  %v447_v38 = vmax.f32 %v342_v30, 0.0  ;;  %v344_v39 = vadd.f32 %v343_v34, %v2815_v61  ;;  %2390 = vmatprep.subr.bf16.mxu0 %v2511_v22  ;;  %2414 = vmatprep.subr.bf16.mxu1 %v2512_v23  ;;  %v2514_v61 = vld [vmem:[%s3074_s3 + $0xe8] sm:$0xff]   ;;  %v411_v54 = vadd.f32 %v410_v53, %v2820_v9  ;;  %v2538_v20 = vld [vmem:[%s3075_s5 + $0x38] sm:$0xff]   ;;  %v2544_v29 = vld [vmem:[%s3075_s5 + $0x20] sm:$0xff]  }
 0x102   :  { %v412_v48 = vpop.f32.mrf.mxu1  ;;  %v2541_v26 = vld [vmem:[%s3075_s5 + $0x68] sm:$0xff]   ;;  %v2545_v30 = vld [vmem:[%s3075_s5 + $0x58] sm:$0xff]   ;;  %v2996_v50 = vld [vmem:[%s3077_s4] ss:$0 sm:$0xff] }
 0x103   :  { %559 = vst [vmem:[#allocation2 + $0x60] sm:$0xff] %v2176_v37  ;;  %v448_v44 = vmax.f32 %v344_v39, 0.0  ;;  %v413_v51 = vadd.f32 %v412_v48, %v2823_v13  ;;  %v445_v56 = vmax.f32 %v411_v54, 0.0  ;;  %v2546_v31 = vld [vmem:[%s3075_s5 + $0x18] sm:$0xff]   ;;  %v2549_v34 = vld [vmem:[%s3075_s5 + $0x48] sm:$0xff]   ;;  %v2552_v37 = vld [vmem:[%s3075_s5] sm:$0xff]  }
 0x104   :  { %2391 = vmatpush3.bf16.msra.mxu0 %v2511_v22  ;;  %2415 = vmatpush3.bf16.msra.mxu1 %v2512_v23  ;;  %v414_v57 = vpop.f32.mrf.mxu1  ;;  %v2539_v22 = vld [vmem:[%s3075_s5 + $0x70] sm:$0xff]   ;;  %v2557_v39 = vld [vmem:[%s3075_s5 + $0xb8] sm:$0xff]   ;;  %v2564_v42 = vld [vmem:[%s3075_s5 + $0xa8] sm:$0xff]  }
 0x105   :  { %v2178_v46 = vpack.c.bf16 %v448_v44, %v447_v38  ;;  %2392 = vmatprep.subr.bf16.mxu0 %v2513_v60  ;;  %2416 = vmatprep.subr.bf16.mxu1 %v2514_v61  ;;  %v446_v58 = vmax.f32 %v413_v51, 0.0  ;;  %v415_v59 = vadd.f32 %v414_v57, %v2820_v9  ;;  %v2540_v23 = vld [vmem:[%s3075_s5 + $0x30] sm:$0xff]   ;;  %v2556_v38 = vld [vmem:[%s3075_s5 + $0xf8] sm:$0xff]   ;;  %v2566_v44 = vld [vmem:[%s3075_s5 + $0xa0] sm:$0xff]  }
 0x106   :  { %v2515_v49 = vld [vmem:[#allocation2 + $0x40] ss:$16 sps:$4 sm:$0xff]   ;;  %v2516_v52 = vld [vmem:[#allocation2 + $0x44] ss:$16 sps:$4 sm:$0xff]   ;;  %v416_v62 = vpop.f32.mrf.mxu1  ;;  %v2571_v53 = vld [vmem:[%s3075_s5 + $0x98] sm:$0xff]  }
 0x107   :  { %561 = vst [vmem:[#allocation2 + $0x70] sm:$0xff] %v2178_v46  ;;  %2360 = vmatprep.mubr.bf16.mxu0 %v2515_v49  ;;  %2384 = vmatprep.mubr.bf16.mxu1 %v2516_v52  ;;  %v2177_v0 = vpack.c.bf16 %v446_v58, %v445_v56  ;;  %v449_v1 = vmax.f32 %v415_v59, 0.0  ;;  %v417_v2 = vadd.f32 %v416_v62, %v2823_v13  ;;  %v2524_v13 = vld [vmem:[#allocation2 + $0xc] ss:$16 sps:$4 sm:$0xff]   ;;  %v2533_v17 = vld [vmem:[#allocation2 + $0x48] ss:$16 sps:$4 sm:$0xff]  }
 0x108   :  { %2393 = vmatpush3.bf16.msra.mxu0 %v2513_v60  ;;  %2417 = vmatpush3.bf16.msra.mxu1 %v2514_v61  ;;  %v2534_v19 = vld [vmem:[#allocation2 + $0x4c] ss:$16 sps:$4 sm:$0xff]   ;;  %v2561_v60 = vld [vmem:[%s3075_s5 + $0xb0] sm:$0xff]   ;;  %v2579_v48 = vld [vmem:[%s3075_s5 + $0xc0] sm:$0xff]  }
 0x109   :  { %2394 = vmatprep.subr.bf16.mxu0 %v2517_v47  ;;  %2418 = vmatprep.subr.bf16.mxu1 %v2518_v55  ;;  %560 = vst [vmem:[#allocation2 + $0x68] sm:$0xff] %v2177_v0  ;;  %v450_v9 = vmax.f32 %v417_v2, 0.0  ;;  %v2569_v61 = vld [vmem:[%s3075_s5 + $0xd8] sm:$0xff]   ;;  %v2575_v54 = vld [vmem:[%s3075_s5 + $0x90] sm:$0xff]   ;;  %v2576_v46 = vld [vmem:[%s3075_s5 + $0xc8] sm:$0xff]  }
 0x10a   :  { %v2580_v49 = vld [vmem:[%s3075_s5 + $0x80] sm:$0xff]  }
 0x10b   :  { %v2179_v7 = vpack.c.bf16 %v450_v9, %v449_v1  ;;  %v3001_v51 = vld [vmem:[%s3077_s4 + $0x1] ss:$0 sm:$0xff] }
 0x10c   :  { %2395 = vmatpush3.bf16.msra.mxu0 %v2517_v47  ;;  %2419 = vmatpush3.bf16.msra.mxu1 %v2518_v55  ;;  %v2578_v47 = vld [vmem:[%s3075_s5 + $0x88] sm:$0xff]  }
 0x10d   :  { %2396 = vmatprep.subr.bf16.mxu0 %v2519_v63  ;;  %2420 = vmatprep.subr.bf16.mxu1 %v2520_v3  ;;  %562 = vst [vmem:[#allocation2 + $0x78] sm:$0xff] %v2179_v7 }
 0x10e   :  { %v2521_v6 = vld [vmem:[#allocation2 + $0x60] ss:$16 sps:$4 sm:$0xff]   ;;  %v2522_v8 = vld [vmem:[#allocation2 + $0x64] ss:$16 sps:$4 sm:$0xff]  }
 0x10f   :  { %2361 = vmatmul.mubr.bf16.gmra.mxu0 %v2521_v6  ;;  %2385 = vmatmul.mubr.bf16.gmra.mxu1 %v2522_v8 }
 0x110   :  { %2397 = vmatpush3.bf16.msra.mxu0 %v2519_v63  ;;  %2421 = vmatpush3.bf16.msra.mxu1 %v2520_v3 }
 0x111   :  { %2404 = vmatprep.mubr.bf16.mxu0 %v2523_v4  ;;  %2428 = vmatprep.mubr.bf16.mxu1 %v2524_v13 }
 0x112   :  { %2398 = vmatprep.subr.bf16.mxu0 %v2525_v5  ;;  %2422 = vmatprep.subr.bf16.mxu1 %v2526_v10 }
 0x114   :  { %2399 = vmatpush3.bf16.msra.mxu0 %v2525_v5  ;;  %2423 = vmatpush3.bf16.msra.mxu1 %v2526_v10  ;;  %v2535_v24 = vld [vmem:[#allocation2 + $0x68] ss:$16 sps:$4 sm:$0xff]   ;;  %v2536_v25 = vld [vmem:[#allocation2 + $0x6c] ss:$16 sps:$4 sm:$0xff]  }
 0x115   :  { %2400 = vmatprep.subr.bf16.mxu0 %v2527_v11  ;;  %2424 = vmatprep.subr.bf16.mxu1 %v2528_v12 }
 0x118   :  { %2401 = vmatpush3.bf16.msra.mxu0 %v2527_v11  ;;  %2425 = vmatpush3.bf16.msra.mxu1 %v2528_v12 }
 0x119   :  { %2402 = vmatprep.subr.bf16.mxu0 %v2529_v14  ;;  %2426 = vmatprep.subr.bf16.mxu1 %v2530_v15 }
 0x11c   :  { %2403 = vmatpush3.bf16.msra.mxu0 %v2529_v14  ;;  %2427 = vmatpush3.bf16.msra.mxu1 %v2530_v15 }
 0x11d   :  { %2260 = vmatprep.subr.bf16.mxu0 %v2537_v16  ;;  %2300 = vmatprep.subr.bf16.mxu1 %v2556_v38 }
 0x11f   :  { %2405 = vmatmul.mubr.bf16.vlgmr.msra.gmra.mxu0 %v2531_v18  ;;  %2429 = vmatmul.mubr.bf16.vlgmr.msra.gmra.mxu1 %v2532_v21 }
 0x120   :  { %2408 = vmatprep.mubr.bf16.mxu0 %v2533_v17  ;;  %2432 = vmatprep.mubr.bf16.mxu1 %v2534_v19 }
 0x121   :  { %2261 = vmatpush3.bf16.msra.mxu0 %v2538_v20  ;;  %2301 = vmatpush3.bf16.msra.mxu1 %v2557_v39 }
 0x122   :  { %2262 = vmatprep.subr.bf16.mxu0 %v2539_v22  ;;  %2302 = vmatprep.subr.bf16.mxu1 %v2560_v40 }
 0x125   :  { %2263 = vmatpush3.bf16.msra.mxu0 %v2540_v23  ;;  %2303 = vmatpush3.bf16.msra.mxu1 %v2561_v60 }
 0x126   :  { %2264 = vmatprep.subr.bf16.mxu0 %v2541_v26  ;;  %2304 = vmatprep.subr.bf16.mxu1 %v2562_v41 }
 0x127   :  { %2409 = vmatmul.mubr.bf16.gmra.mxu0 %v2535_v24  ;;  %2433 = vmatmul.mubr.bf16.gmra.mxu1 %v2536_v25 }
 0x129   :  { %2265 = vmatpush3.bf16.msra.mxu0 %v2542_v27  ;;  %2305 = vmatpush3.bf16.msra.mxu1 %v2564_v42 }
 0x12a   :  { %2266 = vmatprep.subr.bf16.mxu0 %v2543_v28  ;;  %2306 = vmatprep.subr.bf16.mxu1 %v2565_v43 }
 0x12d   :  { %2267 = vmatpush3.bf16.msra.mxu0 %v2544_v29  ;;  %2307 = vmatpush3.bf16.msra.mxu1 %v2566_v44 }
 0x12e   :  { %2268 = vmatprep.subr.bf16.mxu0 %v2545_v30  ;;  %2308 = vmatprep.subr.bf16.mxu1 %v2569_v61 }
 0x131   :  { %2269 = vmatpush3.bf16.msra.mxu0 %v2546_v31  ;;  %2309 = vmatpush3.bf16.msra.mxu1 %v2571_v53 }
 0x132   :  { %2270 = vmatprep.subr.bf16.mxu0 %v2547_v32  ;;  %2310 = vmatprep.subr.bf16.mxu1 %v2574_v45 }
 0x135   :  { %2271 = vmatpush3.bf16.msra.mxu0 %v2548_v33  ;;  %2311 = vmatpush3.bf16.msra.mxu1 %v2575_v54 }
 0x136   :  { %2272 = vmatprep.subr.bf16.mxu0 %v2549_v34  ;;  %2312 = vmatprep.subr.bf16.mxu1 %v2576_v46 }
 0x139   :  { %2273 = vmatpush3.bf16.msra.mxu0 %v2550_v35  ;;  %2313 = vmatpush3.bf16.msra.mxu1 %v2578_v47 }
 0x13a   :  { %2274 = vmatprep.subr.bf16.mxu0 %v2551_v36  ;;  %2314 = vmatprep.subr.bf16.mxu1 %v2579_v48 }
 0x13d   :  { %2275 = vmatpush3.bf16.msra.mxu0 %v2552_v37  ;;  %2315 = vmatpush3.bf16.msra.mxu1 %v2580_v49 }
 0x1bf   :  { %v2358_v52 = vpop.f32.mrf.mxu0  ;;  %v2382_v56 = vpop.f32.mrf.mxu1 }
 0x1c0   :  { %v709_v55 = vadd.f32 %v2358_v52, %v2996_v50  ;;  %v926_v57 = vadd.f32 %v2382_v56, %v3001_v51 }
 0x1c1   :  { %v700_v58 = vpop.f32.mrf.mxu0  ;;  %v917_v63 = vpop.f32.mrf.mxu1 }
 0x1c2   :  { %v733_v59 = vmax.f32 %v709_v55, 0.0  ;;  %v701_v62 = vadd.f32 %v2996_v50, %v700_v58  ;;  %v950_v0 = vmax.f32 %v926_v57, 0.0  ;;  %v918_v1 = vadd.f32 %v3001_v51, %v917_v63  ;;  %v3022_v58 = vld [vmem:[%s3077_s4 + $0x2] ss:$0 sm:$0xff] }
 0x1c3   :  { %v2359_v2 = vpop.f32.mrf.mxu0  ;;  %v2383_v5 = vpop.f32.mrf.mxu1 }
 0x1c4   :  { %v2182_v3 = vpack.c.bf16 %v733_v59, %v733_v59  ;;  %v731_v9 = vmax.f32 %v701_v62, 0.0  ;;  %v712_v4 = vadd.f32 %v2359_v2, %v2996_v50  ;;  %v2190_v6 = vpack.c.bf16 %v950_v0, %v950_v0  ;;  %v3027_v59 = vld [vmem:[%s3077_s4 + $0x3] ss:$0 sm:$0xff] }
 0x1c5   :  { %v948_v7 = vmax.f32 %v918_v1, 0.0  ;;  %v929_v8 = vadd.f32 %v2383_v5, %v3001_v51  ;;  %v703_v13 = vpop.f32.mrf.mxu0  ;;  %v920_v14 = vpop.f32.mrf.mxu1 }
 0x1c6   :  { %773 = vst [vmem:[#allocation2 + $0x20] sm:$0xf] %v2182_v3  ;;  %v2180_v10 = vpack.c.bf16 %v731_v9, %v731_v9  ;;  %v734_v11 = vmax.f32 %v712_v4, 0.0  ;;  %v704_v12 = vadd.f32 %v2996_v50, %v703_v13  ;;  %990 = vst [vmem:[#allocation2 + $0x24] sm:$0xf] %v2190_v6  ;;  %v921_v17 = vadd.f32 %v3001_v51, %v920_v14 }
 0x1c7   :  { %v2188_v15 = vpack.c.bf16 %v948_v7, %v948_v7  ;;  %v951_v16 = vmax.f32 %v929_v8, 0.0 }
 0x1c8   :  { %771 = vst [vmem:[#allocation2] sm:$0xf] %v2180_v10  ;;  %v2183_v18 = vpack.c.bf16 %v734_v11, %v734_v11  ;;  %v732_v19 = vmax.f32 %v704_v12, 0.0  ;;  %v949_v21 = vmax.f32 %v921_v17, 0.0 }
 0x1c9   :  { %988 = vst [vmem:[#allocation2 + $0x4] sm:$0xf] %v2188_v15  ;;  %v2191_v20 = vpack.c.bf16 %v951_v16, %v951_v16 }
 0x1ca   :  { %774 = vst [vmem:[#allocation2 + $0x30] sm:$0xf] %v2183_v18  ;;  %v2181_v22 = vpack.c.bf16 %v732_v19, %v732_v19  ;;  %v2189_v23 = vpack.c.bf16 %v949_v21, %v949_v21 }
 0x1cb   :  { %991 = vst [vmem:[#allocation2 + $0x34] sm:$0xf] %v2191_v20 }
 0x1cc   :  { %772 = vst [vmem:[#allocation2 + $0x10] sm:$0xf] %v2181_v22  ;;  %989 = vst [vmem:[#allocation2 + $0x14] sm:$0xf] %v2189_v23 }
 0x1cf   :  { %v2362_v24 = vpop.f32.mrf.mxu0  ;;  %v2386_v26 = vpop.f32.mrf.mxu1 }
 0x1d0   :  { %v725_v25 = vadd.f32 %v2362_v24, %v2996_v50  ;;  %v942_v27 = vadd.f32 %v2386_v26, %v3001_v51 }
 0x1d1   :  { %v716_v28 = vpop.f32.mrf.mxu0  ;;  %v933_v31 = vpop.f32.mrf.mxu1 }
 0x1d2   :  { %v737_v29 = vmax.f32 %v725_v25, 0.0  ;;  %v717_v30 = vadd.f32 %v2996_v50, %v716_v28  ;;  %v954_v32 = vmax.f32 %v942_v27, 0.0  ;;  %v934_v33 = vadd.f32 %v3001_v51, %v933_v31  ;;  %v2558_v54 = vld [vmem:[#allocation2 + $0x24] ss:$16 sps:$4 sm:$0xff]  }
 0x1d3   :  { %v2363_v34 = vpop.f32.mrf.mxu0  ;;  %v2387_v38 = vpop.f32.mrf.mxu1  ;;  %v2553_v39 = vld [vmem:[#allocation2] ss:$16 sps:$4 sm:$0xff]   ;;  %v2555_v40 = vld [vmem:[#allocation2 + $0x4] ss:$16 sps:$4 sm:$0xff]  }
 0x1d4   :  { %v2186_v35 = vpack.c.bf16 %v737_v29, %v737_v29  ;;  %v735_v36 = vmax.f32 %v717_v30, 0.0  ;;  %v728_v37 = vadd.f32 %v2363_v34, %v2996_v50  ;;  %v2194_v60 = vpack.c.bf16 %v954_v32, %v954_v32  ;;  %1821 = vmatprep.mubr.bf16.mxu0 %v2555_v40 }
 0x1d5   :  { %v952_v41 = vmax.f32 %v934_v33, 0.0  ;;  %v945_v42 = vadd.f32 %v2387_v38, %v3001_v51  ;;  %v719_v43 = vpop.f32.mrf.mxu0  ;;  %v936_v45 = vpop.f32.mrf.mxu1  ;;  %1822 = vmatmul.mubr.bf16.vlgmr.msra.gmra.mxu0 %v2553_v39 }
 0x1d6   :  { %777 = vst [vmem:[#allocation2 + $0x60] sm:$0xf] %v2186_v35  ;;  %v2184_v44 = vpack.c.bf16 %v735_v36, %v735_v36  ;;  %v738_v61 = vmax.f32 %v728_v37, 0.0  ;;  %v720_v53 = vadd.f32 %v2996_v50, %v719_v43  ;;  %994 = vst [vmem:[#allocation2 + $0x64] sm:$0xf] %v2194_v60  ;;  %v937_v48 = vadd.f32 %v3001_v51, %v936_v45 }
 0x1d7   :  { %v2192_v46 = vpack.c.bf16 %v952_v41, %v952_v41  ;;  %v955_v47 = vmax.f32 %v945_v42, 0.0  ;;  %1829 = vmatprep.mubr.bf16.mxu0 %v2558_v54  ;;  %v2563_v51 = vld [vmem:[#allocation2 + $0x20] ss:$16 sps:$4 sm:$0xff]  }
 0x1d8   :  { %775 = vst [vmem:[#allocation2 + $0x40] sm:$0xf] %v2184_v44  ;;  %v2187_v49 = vpack.c.bf16 %v738_v61, %v738_v61  ;;  %v736_v52 = vmax.f32 %v720_v53, 0.0  ;;  %v953_v56 = vmax.f32 %v937_v48, 0.0 }
 0x1d9   :  { %992 = vst [vmem:[#allocation2 + $0x44] sm:$0xf] %v2192_v46  ;;  %v2195_v55 = vpack.c.bf16 %v955_v47, %v955_v47 }
 0x1da   :  { %778 = vst [vmem:[#allocation2 + $0x70] sm:$0xf] %v2187_v49  ;;  %v2185_v57 = vpack.c.bf16 %v736_v52, %v736_v52  ;;  %v2193_v50 = vpack.c.bf16 %v953_v56, %v953_v56 }
 0x1db   :  { %995 = vst [vmem:[#allocation2 + $0x74] sm:$0xf] %v2195_v55 }
 0x1dc   :  { %776 = vst [vmem:[#allocation2 + $0x50] sm:$0xf] %v2185_v57  ;;  %993 = vst [vmem:[#allocation2 + $0x54] sm:$0xf] %v2193_v50 }
 0x1dd   :  { %1830 = vmatmul.mubr.bf16.gmra.mxu0 %v2563_v51 }
 0x1df   :  { %v2406_v62 = vpop.f32.mrf.mxu0  ;;  %v2430_v0 = vpop.f32.mrf.mxu1 }
 0x1e0   :  { %v1143_v63 = vadd.f32 %v2406_v62, %v3022_v58  ;;  %v1360_v1 = vadd.f32 %v2430_v0, %v3027_v59 }
 0x1e1   :  { %v1134_v2 = vpop.f32.mrf.mxu0  ;;  %v1351_v4 = vpop.f32.mrf.mxu1  ;;  %v2577_v48 = vld [vmem:[#allocation2 + $0x60] ss:$16 sps:$4 sm:$0xff]  }
 0x1e2   :  { %v1167_v3 = vmax.f32 %v1143_v63, 0.0  ;;  %v1135_v9 = vadd.f32 %v3022_v58, %v1134_v2  ;;  %v1384_v5 = vmax.f32 %v1360_v1, 0.0  ;;  %v1352_v6 = vadd.f32 %v3027_v59, %v1351_v4  ;;  %v2572_v23 = vld [vmem:[#allocation2 + $0x64] ss:$16 sps:$4 sm:$0xff]  }
 0x1e3   :  { %v2407_v7 = vpop.f32.mrf.mxu0  ;;  %v2431_v11 = vpop.f32.mrf.mxu1  ;;  %v2567_v12 = vld [vmem:[#allocation2 + $0x44] ss:$16 sps:$4 sm:$0xff]   ;;  %v2570_v14 = vld [vmem:[#allocation2 + $0x40] ss:$16 sps:$4 sm:$0xff]  }
 0x1e4   :  { %v2198_v8 = vpack.c.bf16 %v1167_v3, %v1167_v3  ;;  %v1165_v13 = vmax.f32 %v1135_v9, 0.0  ;;  %v1146_v10 = vadd.f32 %v2407_v7, %v3022_v58  ;;  %v2206_v15 = vpack.c.bf16 %v1384_v5, %v1384_v5  ;;  %1837 = vmatprep.mubr.bf16.mxu0 %v2567_v12 }
 0x1e5   :  { %v1382_v16 = vmax.f32 %v1352_v6, 0.0  ;;  %v1363_v17 = vadd.f32 %v2431_v11, %v3027_v59  ;;  %v1137_v18 = vpop.f32.mrf.mxu0  ;;  %v1354_v22 = vpop.f32.mrf.mxu1  ;;  %1838 = vmatmul.mubr.bf16.gmra.mxu0 %v2570_v14 }
 0x1e6   :  { %1207 = vst [vmem:[#allocation2 + $0x28] sm:$0xf] %v2198_v8  ;;  %v2196_v19 = vpack.c.bf16 %v1165_v13, %v1165_v13  ;;  %v1168_v20 = vmax.f32 %v1146_v10, 0.0  ;;  %v1138_v21 = vadd.f32 %v3022_v58, %v1137_v18  ;;  %1424 = vst [vmem:[#allocation2 + $0x2c] sm:$0xf] %v2206_v15  ;;  %v1355_v26 = vadd.f32 %v3027_v59, %v1354_v22 }
 0x1e7   :  { %v2204_v24 = vpack.c.bf16 %v1382_v16, %v1382_v16  ;;  %v1385_v25 = vmax.f32 %v1363_v17, 0.0  ;;  %v2410_v27 = vpop.f32.mrf.mxu0  ;;  %v2434_v31 = vpop.f32.mrf.mxu1  ;;  %1845 = vmatprep.mubr.bf16.mxu0 %v2572_v23 }
 0x1e8   :  { %1205 = vst [vmem:[#allocation2 + $0x8] sm:$0xf] %v2196_v19  ;;  %v2199_v28 = vpack.c.bf16 %v1168_v20, %v1168_v20  ;;  %v1166_v29 = vmax.f32 %v1138_v21, 0.0  ;;  %v1159_v30 = vadd.f32 %v2410_v27, %v3022_v58  ;;  %v1383_v33 = vmax.f32 %v1355_v26, 0.0  ;;  %v2115_v20 = vld [vmem:[%s3078_s6] ss:$0 sm:$0xff] }
 0x1e9   :  { %1422 = vst [vmem:[#allocation2 + $0xc] sm:$0xf] %v2204_v24  ;;  %v2207_v32 = vpack.c.bf16 %v1385_v25, %v1385_v25  ;;  %v1376_v34 = vadd.f32 %v2434_v31, %v3027_v59  ;;  %v1150_v35 = vpop.f32.mrf.mxu0  ;;  %v1367_v39 = vpop.f32.mrf.mxu1 }
 0x1ea   :  { %1208 = vst [vmem:[#allocation2 + $0x38] sm:$0xf] %v2199_v28  ;;  %v2197_v36 = vpack.c.bf16 %v1166_v29, %v1166_v29  ;;  %v1171_v37 = vmax.f32 %v1159_v30, 0.0  ;;  %v1151_v38 = vadd.f32 %v3022_v58, %v1150_v35  ;;  %v2205_v40 = vpack.c.bf16 %v1383_v33, %v1383_v33 }
 0x1eb   :  { %1425 = vst [vmem:[#allocation2 + $0x3c] sm:$0xf] %v2207_v32  ;;  %v1388_v60 = vmax.f32 %v1376_v34, 0.0  ;;  %v1368_v41 = vadd.f32 %v3027_v59, %v1367_v39  ;;  %v2411_v42 = vpop.f32.mrf.mxu0  ;;  %v2435_v53 = vpop.f32.mrf.mxu1 }
 0x1ec   :  { %1206 = vst [vmem:[#allocation2 + $0x18] sm:$0xf] %v2197_v36  ;;  %v2202_v43 = vpack.c.bf16 %v1171_v37, %v1171_v37  ;;  %v1169_v44 = vmax.f32 %v1151_v38, 0.0  ;;  %v1162_v61 = vadd.f32 %v2411_v42, %v3022_v58  ;;  %1423 = vst [vmem:[#allocation2 + $0x1c] sm:$0xf] %v2205_v40  ;;  %v1379_v46 = vadd.f32 %v2435_v53, %v3027_v59 }
 0x1ed   :  { %v2210_v45 = vpack.c.bf16 %v1388_v60, %v1388_v60  ;;  %v1386_v54 = vmax.f32 %v1368_v41, 0.0  ;;  %v1153_v47 = vpop.f32.mrf.mxu0  ;;  %v1370_v56 = vpop.f32.mrf.mxu1  ;;  %1846 = vmatmul.mubr.bf16.gmra.mxu0 %v2577_v48 }
 0x1ee   :  { %1211 = vst [vmem:[#allocation2 + $0x68] sm:$0xf] %v2202_v43  ;;  %v2200_v49 = vpack.c.bf16 %v1169_v44, %v1169_v44  ;;  %v1172_v52 = vmax.f32 %v1162_v61, 0.0  ;;  %v1154_v55 = vadd.f32 %v3022_v58, %v1153_v47  ;;  %v1389_v50 = vmax.f32 %v1379_v46, 0.0 }
 0x1ef   :  { %1428 = vst [vmem:[#allocation2 + $0x6c] sm:$0xf] %v2210_v45  ;;  %v2208_v57 = vpack.c.bf16 %v1386_v54, %v1386_v54  ;;  %v1371_v51 = vadd.f32 %v3027_v59, %v1370_v56 }
 0x1f0   :  { %1209 = vst [vmem:[#allocation2 + $0x48] sm:$0xf] %v2200_v49  ;;  %v2203_v62 = vpack.c.bf16 %v1172_v52, %v1172_v52  ;;  %v1170_v63 = vmax.f32 %v1154_v55, 0.0  ;;  %v2211_v0 = vpack.c.bf16 %v1389_v50, %v1389_v50 }
 0x1f1   :  { %1426 = vst [vmem:[#allocation2 + $0x4c] sm:$0xf] %v2208_v57  ;;  %v1387_v1 = vmax.f32 %v1371_v51, 0.0  ;;  %v2586_v59 = vld [vmem:[#allocation2 + $0x28] ss:$16 sps:$4 sm:$0xff]  }
 0x1f2   :  { %1212 = vst [vmem:[#allocation2 + $0x78] sm:$0xf] %v2203_v62  ;;  %v2201_v2 = vpack.c.bf16 %v1170_v63, %v1170_v63  ;;  %1429 = vst [vmem:[#allocation2 + $0x7c] sm:$0xf] %v2211_v0  ;;  %v2584_v4 = vld [vmem:[#allocation2 + $0x2c] ss:$16 sps:$4 sm:$0xff]  }
 0x1f3   :  { %v2209_v3 = vpack.c.bf16 %v1387_v1, %v1387_v1  ;;  %v2581_v9 = vld [vmem:[#allocation2 + $0x8] ss:$16 sps:$4 sm:$0xff]   ;;  %v2583_v58 = vld [vmem:[#allocation2 + $0xc] ss:$16 sps:$4 sm:$0xff]  }
 0x1f4   :  { %1210 = vst [vmem:[#allocation2 + $0x58] sm:$0xf] %v2201_v2  ;;  %1886 = vmatprep.mubr.bf16.mxu1 %v2583_v58 }
 0x1f5   :  { %1427 = vst [vmem:[#allocation2 + $0x5c] sm:$0xf] %v2209_v3  ;;  %1887 = vmatmul.mubr.bf16.vlgmr.msra.gmra.mxu1 %v2581_v9 }
 0x1f6   :  { %1894 = vmatprep.mubr.bf16.mxu1 %v2584_v4 }
 0x1f9   :  { %v2590_v7 = vld [vmem:[#allocation2 + $0x6c] ss:$16 sps:$4 sm:$0xff]   ;;  %v2592_v8 = vld [vmem:[#allocation2 + $0x68] ss:$16 sps:$4 sm:$0xff]  }
 0x1fb   :  { %v2589_v6 = vld [vmem:[#allocation2 + $0x48] ss:$16 sps:$4 sm:$0xff]  }
 0x1fc   :  { %v2587_v5 = vld [vmem:[#allocation2 + $0x4c] ss:$16 sps:$4 sm:$0xff]  }
 0x1fd   :  { %1895 = vmatmul.mubr.bf16.gmra.mxu1 %v2586_v59 }
 0x1fe   :  { %1902 = vmatprep.mubr.bf16.mxu1 %v2587_v5 }
 0x205   :  { %1903 = vmatmul.mubr.bf16.gmra.mxu1 %v2589_v6 }
 0x206   :  { %1910 = vmatprep.mubr.bf16.mxu1 %v2590_v7 }
 0x20d   :  { %1911 = vmatmul.mubr.bf16.gmra.mxu1 %v2592_v8 }
 0x295   :  { %v2276_v13 = vpop.f32.mrf.mxu0 }
 0x297   :  { %v2277_v10 = vpop.f32.mrf.mxu0 }
 0x298   :  { %v2278_v19 = vadd.f32 %v2277_v10, %v2276_v13 }
 0x299   :  { %v2279_v11 = vpop.f32.mrf.mxu0 }
 0x29a   :  { %v1824_v24 = vadd.f32 %v2278_v19, %v2115_v20 }
 0x29b   :  { %v2280_v12 = vpop.f32.mrf.mxu0 }
 0x29c   :  { %v2281_v25 = vadd.f32 %v2280_v12, %v2279_v11 }
 0x29d   :  { %v2282_v14 = vpop.f32.mrf.mxu0 }
 0x29e   :  { %v1827_v31 = vadd.f32 %v2281_v25, %v2115_v20 }
 0x29f   :  { %v2283_v15 = vpop.f32.mrf.mxu0 }
 0x2a0   :  { %v2284_v32 = vadd.f32 %v2283_v15, %v2282_v14 }
 0x2a1   :  { %v2285_v16 = vpop.f32.mrf.mxu0 }
 0x2a2   :  { %v1832_v38 = vadd.f32 %v2284_v32, %v2115_v20 }
 0x2a3   :  { %v2286_v17 = vpop.f32.mrf.mxu0 }
 0x2a4   :  { %v2287_v39 = vadd.f32 %v2286_v17, %v2285_v16 }
 0x2a5   :  { %v2288_v18 = vpop.f32.mrf.mxu0 }
 0x2a6   :  { %v1835_v44 = vadd.f32 %v2287_v39, %v2115_v20 }
 0x2a7   :  { %v2289_v21 = vpop.f32.mrf.mxu0 }
 0x2a8   :  { %v2290_v61 = vadd.f32 %v2289_v21, %v2288_v18 }
 0x2a9   :  { %v2291_v27 = vpop.f32.mrf.mxu0 }
 0x2aa   :  { %v1840_v48 = vadd.f32 %v2290_v61, %v2115_v20 }
 0x2ab   :  { %v2292_v34 = vpop.f32.mrf.mxu0 }
 0x2ac   :  { %v2293_v49 = vadd.f32 %v2292_v34, %v2291_v27 }
 0x2ad   :  { %v2294_v60 = vpop.f32.mrf.mxu0 }
 0x2ae   :  { %v1843_v51 = vadd.f32 %v2293_v49, %v2115_v20 }
 0x2af   :  { %v2295_v45 = vpop.f32.mrf.mxu0 }
 0x2b0   :  { %v2296_v62 = vadd.f32 %v2295_v45, %v2294_v60 }
 0x2b1   :  { %v2297_v55 = vpop.f32.mrf.mxu0 }
 0x2b2   :  { %v1848_v9 = vadd.f32 %v2296_v62, %v2115_v20 }
 0x2b3   :  { %v2298_v0 = vpop.f32.mrf.mxu0 }
 0x2b4   :  { %v2299_v58 = vadd.f32 %v2298_v0, %v2297_v55 }
 0x2b5   :  { %v2316_v22 = vpop.f32.mrf.mxu1 }
 0x2b6   :  { %v1851_v7 = vadd.f32 %v2299_v58, %v2115_v20 }
 0x2b7   :  { %v2317_v23 = vpop.f32.mrf.mxu1 }
 0x2b8   :  { %v2318_v26 = vadd.f32 %v2317_v23, %v2316_v22 }
 0x2b9   :  { %v2319_v28 = vpop.f32.mrf.mxu1 }
 0x2ba   :  { %v1889_v29 = vadd.f32 %v2318_v26, %v1824_v24 }
 0x2bb   :  { %v2320_v30 = vpop.f32.mrf.mxu1 }
 0x2bc   :  { %1919 = vst [vmem:[%s3079_s7] sm:$0xff] %v1889_v29  ;;  %v2321_v33 = vadd.f32 %v2320_v30, %v2319_v28 }
 0x2bd   :  { %v2322_v35 = vpop.f32.mrf.mxu1 }
 0x2be   :  { %v1892_v36 = vadd.f32 %v2321_v33, %v1827_v31 }
 0x2bf   :  { %v2323_v37 = vpop.f32.mrf.mxu1 }
 0x2c0   :  { %1920 = vst [vmem:[%s3079_s7 + $0x8] sm:$0xff] %v1892_v36  ;;  %v2324_v40 = vadd.f32 %v2323_v37, %v2322_v35 }
 0x2c1   :  { %v2325_v41 = vpop.f32.mrf.mxu1 }
 0x2c2   :  { %v1897_v42 = vadd.f32 %v2324_v40, %v1832_v38 }
 0x2c3   :  { %v2326_v43 = vpop.f32.mrf.mxu1 }
 0x2c4   :  { %1921 = vst [vmem:[%s3079_s7 + $0x10] sm:$0xff] %v1897_v42  ;;  %v2327_v53 = vadd.f32 %v2326_v43, %v2325_v41 }
 0x2c5   :  { %v2328_v54 = vpop.f32.mrf.mxu1 }
 0x2c6   :  { %v1900_v46 = vadd.f32 %v2327_v53, %v1835_v44 }
 0x2c7   :  { %v2329_v47 = vpop.f32.mrf.mxu1 }
 0x2c8   :  { %1922 = vst [vmem:[%s3079_s7 + $0x18] sm:$0xff] %v1900_v46  ;;  %v2330_v52 = vadd.f32 %v2329_v47, %v2328_v54 }
 0x2c9   :  { %v2331_v56 = vpop.f32.mrf.mxu1 }
 0x2ca   :  { %v1905_v57 = vadd.f32 %v2330_v52, %v1840_v48 }
 0x2cb   :  { %v2332_v50 = vpop.f32.mrf.mxu1 }
 0x2cc   :  { %1923 = vst [vmem:[%s3079_s7 + $0x20] sm:$0xff] %v1905_v57  ;;  %v2333_v63 = vadd.f32 %v2332_v50, %v2331_v56 }
 0x2cd   :  { %v2334_v1 = vpop.f32.mrf.mxu1 }
 0x2ce   :  { %v1908_v2 = vadd.f32 %v2333_v63, %v1843_v51 }
 0x2cf   :  { %v2335_v3 = vpop.f32.mrf.mxu1 }
 0x2d0   :  { %1924 = vst [vmem:[%s3079_s7 + $0x28] sm:$0xff] %v1908_v2  ;;  %v2336_v4 = vadd.f32 %v2335_v3, %v2334_v1 }
 0x2d1   :  { %v2337_v59 = vpop.f32.mrf.mxu1 }
 0x2d2   :  { %v1913_v5 = vadd.f32 %v2336_v4, %v1848_v9 }
 0x2d3   :  { %v2338_v6 = vpop.f32.mrf.mxu1 }
 0x2d4   :  { %1925 = vst [vmem:[%s3079_s7 + $0x30] sm:$0xff] %v1913_v5  ;;  %v2339_v8 = vadd.f32 %v2338_v6, %v2337_v59 }
 0x2d6   :  { %v1916_v13 = vadd.f32 %v2339_v8, %v1851_v7 }
 0x2d8   :  { %1926 = vst [vmem:[%s3079_s7 + $0x38] sm:$0xff] %v1916_v13 }

</bundles_post_ra>
